<compile_context>
chip_gen: v6e
topology: v6e:2x2x1
jax: 0.10.0
libtpu: 0.0.40
codegen_flags: <defaults>
</compile_context>

<pallas_src>
import jax
import jax.numpy as jnp
from jax.experimental import pallas as pl
from jax.experimental.pallas import tpu as pltpu


def _round_up(v, m):
    return ((v + m - 1) // m) * m


def _consequent_kernel(x_ref, w_ref, b_ref, o_ref):
    """One grid step: y_tile = x_tile @ W + b.

    x_ref : (TN, K)   input cases (possibly g-folded: K = g*n_in)
    w_ref : (K, M)    coefficients (possibly block-diagonal g-expanded)
    b_ref : (1, M)    constant terms
    o_ref : (TN, M)   flattened output tile
    """
    acc = jnp.dot(x_ref[...], w_ref[...],
                  preferred_element_type=jnp.float32,
                  precision=jax.lax.Precision.HIGHEST)
    o_ref[...] = (acc + b_ref[...]).astype(o_ref.dtype)


def consequent_forward(x, coeff, *, zerotype=False, tile_cases=1024):
    """Pallas implementation of ConsequentLayer.forward.

    x      : (n_cases, n_in) float32
    coeff  : (n_rules, n_out, n_in+1) float32  (or (n_rules, n_out, 1) if zerotype)
    returns: (n_cases, n_out, n_rules) float32
    """
    n_cases, n_in = x.shape
    n_rules, n_out, k1 = coeff.shape

    if zerotype:
        # zerotype forward is a pure constant broadcast (x_plus == ones);
        # plain JAX is exact and cheaper than any kernel launch.
        assert k1 == 1
        return jnp.broadcast_to(
            jnp.transpose(coeff[:, :, 0], (1, 0))[None, :, :],
            (n_cases, n_out, n_rules))

    assert k1 == n_in + 1, "coeff last dim must be n_in + 1"
    m = n_out * n_rules

    # ---- One-time parameter prep (tiny, length-M tensors) -----------------
    # W[k, o*R + r] = coeff[r, o, k];  b[o*R + r] = coeff[r, o, n_in]
    c2 = jnp.transpose(coeff, (1, 0, 2)).reshape(m, k1)   # rows ordered (o, r)
    w = jnp.transpose(c2[:, :n_in])                       # (n_in, M)
    b = c2[:, n_in].reshape(1, m)                         # (1, M)

    # ---- Lane-dense fold: g consecutive cases share one 128-lane row ------
    g = 1
    if m < 128 and 128 % m == 0:
        g_cand = 128 // m
        if g_cand > 1 and n_cases % g_cand == 0 and n_cases >= g_cand:
            g = g_cand

    if g > 1:
        kf, mf = g * n_in, g * m                    # mf == 128
        n_rows = n_cases // g
        x_in = x.reshape(n_rows, kf)                # free reshape
        eye = jnp.eye(g, dtype=w.dtype)             # block-diagonal expansion
        w_in = (eye[:, None, :, None] * w[None, :, None, :]).reshape(kf, mf)
        b_in = jnp.tile(b, (1, g))                  # (1, g*M)
    else:
        kf, mf = n_in, m
        n_rows = n_cases
        x_in, w_in, b_in = x, w, b

    # ---- Row-tile selection (in folded rows) ------------------------------
    target = max(8, tile_cases // g)
    if n_rows <= 8:
        tn = n_rows                                  # single full-extent block
    else:
        # >= 2 grid steps whenever possible (v7x has 2 TensorCores).
        tn = min(target, _round_up(pl.cdiv(n_rows, 2), 8))
        # VMEM budget: double-buffered x + out blocks (lane-padded) <= ~8 MiB,
        # comfortably under the scoped default on all chips (incl. v7x).
        bytes_per_row = 4 * (_round_up(kf, 128) + _round_up(mf, 128)) * 2
        tn = min(tn, max(8, ((8 << 20) // bytes_per_row) // 8 * 8))
    grid = (pl.cdiv(n_rows, tn),)

    y_flat = pl.pallas_call(
        _consequent_kernel,
        out_shape=jax.ShapeDtypeStruct((n_rows, mf), jnp.float32),
        grid_spec=pltpu.PrefetchScalarGridSpec(
            num_scalar_prefetch=0,
            grid=grid,
            in_specs=[
                pl.BlockSpec((tn, kf), lambda i: (i, 0)),   # x tile
                pl.BlockSpec((kf, mf), lambda i: (0, 0)),   # W (whole, resident)
                pl.BlockSpec((1, mf), lambda i: (0, 0)),    # bias (whole)
            ],
            out_specs=pl.BlockSpec((tn, mf), lambda i: (i, 0)),
        ),
        compiler_params=pltpu.CompilerParams(
            dimension_semantics=("parallel",)),
    )(x_in, w_in, b_in)

    # Both the un-fold and the (o, r) split are free row-major reshapes.
    return y_flat.reshape(n_cases, n_out, n_rules)


def consequent_forward_ref(x, coeff):
    """Pure-JAX reference matching the PyTorch forward semantics."""
    x_plus = jnp.concatenate(
        [x, jnp.ones((x.shape[0], 1), x.dtype)], axis=1)
    # torch: matmul(coeff, x_plus.T).transpose(0, 2) -> y[n, o, r]
    return jnp.einsum('rok,nk->nor', coeff, x_plus,
                      precision=jax.lax.Precision.HIGHEST)


if __name__ == "__main__":
    key = jax.random.PRNGKey(0)
    k1, k2, k3, k4 = jax.random.split(key, 4)

    # --- Case 1: lane-dense folded path (M = 32 divides 128 -> g = 4) ------
    n_cases, n_in, n_rules, n_out = 256, 4, 16, 2
    x = jax.random.normal(k1, (n_cases, n_in), dtype=jnp.float32)
    coeff = jax.random.normal(k2, (n_rules, n_out, n_in + 1), dtype=jnp.float32)
    y = jax.block_until_ready(consequent_forward(x, coeff))
    y_ref = consequent_forward_ref(x, coeff)
    assert y.shape == (n_cases, n_out, n_rules)
    assert jnp.allclose(y, y_ref, atol=1e-4, rtol=1e-5), "folded path mismatch"

    # --- Case 2: unfolded path with a ragged last tile (M = 24, N = 250) ---
    n_cases2, n_rules2 = 250, 12
    x2 = jax.random.normal(k3, (n_cases2, n_in), dtype=jnp.float32)
    coeff2 = jax.random.normal(
        k4, (n_rules2, n_out, n_in + 1), dtype=jnp.float32)
    y2 = jax.block_until_ready(consequent_forward(x2, coeff2))
    y2_ref = consequent_forward_ref(x2, coeff2)
    assert y2.shape == (n_cases2, n_out, n_rules2)
    assert jnp.allclose(y2, y2_ref, atol=1e-4, rtol=1e-5), "ragged path mismatch"

    # --- Case 3: zerotype (constant consequents, pure broadcast) -----------
    coeff0 = jax.random.normal(k2, (n_rules, n_out, 1), dtype=jnp.float32)
    y0 = jax.block_until_ready(consequent_forward(x, coeff0, zerotype=True))
    y0_ref = jnp.broadcast_to(
        jnp.transpose(coeff0[:, :, 0], (1, 0))[None], (n_cases, n_out, n_rules))
    assert jnp.allclose(y0, y0_ref), "zerotype mismatch"

    # TODO(synk): fit_coeff (torch.linalg.lstsq hybrid-LSE update) is a solver,
    # not part of the forward pass, and is left to host-side linalg.
    print("KERNEL_OK")
</pallas_src>

<mosaic_0001>
module attributes {stable_mosaic.version = 11 : i64} {
  func.func @_consequent_kernel(%arg0: i32, %arg1: memref<32x16xf32, #tpu.memory_space<vmem>>, %arg2: memref<16x128xf32, #tpu.memory_space<vmem>>, %arg3: memref<1x128xf32, #tpu.memory_space<vmem>>, %arg4: memref<32x128xf32, #tpu.memory_space<vmem>>) attributes {dimension_semantics = [#tpu.dimension_semantics<parallel>], iteration_bounds = array<i64: 2>, scalar_prefetch = 0 : i64, scratch_operands = 0 : i64, tpu.core_type = #tpu.core_type<tc>, window_params = [{transform_indices = @transform_0, window_bounds = array<i64: 32, 16>}, {pipeline_mode = #tpu.pipeline_mode<synchronous>, transform_indices = @transform_1, window_bounds = array<i64: 16, 128>}, {pipeline_mode = #tpu.pipeline_mode<synchronous>, transform_indices = @transform_2, window_bounds = array<i64: 1, 128>}, {transform_indices = @transform_3, window_bounds = array<i64: 32, 128>}]} {
    %c0 = arith.constant 0 : index
    %c0_0 = arith.constant 0 : index
    %0 = vector.load %arg1[%c0, %c0_0] : memref<32x16xf32, #tpu.memory_space<vmem>>, vector<32x16xf32>
    %c0_1 = arith.constant 0 : index
    %c0_2 = arith.constant 0 : index
    %1 = vector.load %arg2[%c0_1, %c0_2] : memref<16x128xf32, #tpu.memory_space<vmem>>, vector<16x128xf32>
    %cst = arith.constant dense<0.000000e+00> : vector<32x128xf32>
    %2 = tpu.matmul %0, %1, %cst {dimension_numbers = #tpu.dot_dimension_numbers<[1], [0], [0], [1], [0, 0, 1, 1], [], []>, precision = #tpu.contract_precision<fp32>} : vector<32x16xf32>, vector<16x128xf32>, vector<32x128xf32> -> vector<32x128xf32>
    %c0_3 = arith.constant 0 : index
    %c0_4 = arith.constant 0 : index
    %3 = vector.load %arg3[%c0_3, %c0_4] : memref<1x128xf32, #tpu.memory_space<vmem>>, vector<1x128xf32>
    %4 = vector.broadcast %3 : vector<1x128xf32> to vector<32x128xf32>
    %5 = arith.addf %2, %4 : vector<32x128xf32>
    %c0_5 = arith.constant 0 : index
    %c0_6 = arith.constant 0 : index
    %6 = vector.load %arg4[%c0_5, %c0_6] : memref<32x128xf32, #tpu.memory_space<vmem>>, vector<32x128xf32>
    tpu.vector_store %arg4[%c0_5, %c0_6], %5 {strides = array<i32>} : memref<32x128xf32, #tpu.memory_space<vmem>>, vector<32x128xf32>,
    return
  }
  func.func @transform_0(%arg0: i32) -> (i32, i32) {
    %c0_i32 = arith.constant 0 : i32
    %c0_i32_0 = arith.constant 0 : i32
    return %arg0, %c0_i32 : i32, i32
  }
  func.func @transform_1(%arg0: i32) -> (i32, i32) {
    %c0_i32 = arith.constant 0 : i32
    %c0_i32_0 = arith.constant 0 : i32
    %c0_i32_1 = arith.constant 0 : i32
    return %c0_i32, %c0_i32_0 : i32, i32
  }
  func.func @transform_2(%arg0: i32) -> (i32, i32) {
    %c0_i32 = arith.constant 0 : i32
    %c0_i32_0 = arith.constant 0 : i32
    %c0_i32_1 = arith.constant 0 : i32
    return %c0_i32, %c0_i32_0 : i32, i32
  }
  func.func @transform_3(%arg0: i32) -> (i32, i32) {
    %c0_i32 = arith.constant 0 : i32
    %c0_i32_0 = arith.constant 0 : i32
    return %arg0, %c0_i32 : i32, i32
  }
}

</mosaic_0001>

<bundles_post_ra>
// kernel: tpu_custom_call.1
= control target key start
LH: loop header
LB: loop body
LE: loop exit
PB: predicated region body
PF: predicated region fallthrough
CT: control target
= control target key end

     0   :  { %8 = vsyncpa [#allocation3], 0  ;;  %s1248_s0 = inlined_call_operand.vmem [shape: f32[64,16], index: 0, kind: input, shape index: {}]   ;;  %s1249_s1 = inlined_call_operand.vmem [shape: f32[16,128], index: 1, kind: input, shape index: {}]   ;;  %s1250_s2 = inlined_call_operand.vmem [shape: f32[1,128], index: 2, kind: input, shape index: {}]   ;;  %s1251_s3 = inlined_call_operand.hbm [shape: f32[64,128], index: 3, kind: output, shape index: {}]  }
   0x1   :  { %10 = vsyncpa [#allocation3 + $0x1], 0  ;;  %s1102_s12 = smov 0   ;;  %s1104_s13 = smov 0  }
   0x2   :  { %s1106_s14 = smov 0   ;;  %s1108_s15 = smov 0  }
   0x3 LB: > { %s1123_s16 = sadd.s32 4294967295, %s1077_s15   ;;  %s866_s17 = sadd.s32 4294967294, %s1077_s15   ;;  %s1077_s15 = sphi %s1108_s15, %s1257_s15   ;;  %s1073_s14 = sphi %s1106_s14, %s1256_s14   ;;  %s1069_s13 = sphi %s1104_s13, %s1255_s13   ;;  %s1065_s12 = sphi %s1102_s12, %s1254_s12  }
   0x4   : > { %s1127_s18 = sadd.s32 1, %s1077_s15   ;;  %s91_s19 = sadd.s32 1, %s1073_s14 }
   0x5   : > { %s88_s20 = ssub.s32 %s1077_s15, %s1127_s18  ;;  %p101_p0 = scmp.ne.s32.totalorder %s1073_s14, %s1069_s13 }
   0x6   : > { %p89_p1 = scmp.eq.s32.totalorder %s88_s20, 0  ;;  %p102_p2 = scmp.eq.s32.totalorder %s1123_s16, 1 }
   0x7   : > { %p107_p3 = scmp.ne.s32.totalorder %s1069_s13, %s1065_s12  ;;  %p108_p4 = scmp.eq.s32.totalorder %s866_s17, 1 }
   0x8   : > { %s1138_s21 = scalar_select %p89_p1, %s1073_s14, %s91_s19  }
   0x9   : > { %p1140_p5 = por %p102_p2, %p101_p0  ;;  %p1144_p6 = por %p108_p4, %p107_p3 }
   0xa   : > { %p869_p7 = scmp.ge.s32.totalorder %s1077_s15, 1  ;;  %p141_p8 = scmp.lt.s32.totalorder %s1077_s15, 3 }
   0xc   : > { %p142_p9 = pnand %p869_p7, %p141_p8 }
   0xd   : > { %s871_s28 = sshll.u32 (!%p142_p9), %s1123_s16, 2  ;;  %s162_s8 = sand.u32 (!%p142_p9), 1, %s1069_s13  }
   0xe   : > { %145 = sbr.rel (%p142_p9) target bundleno = 271 (0x10f), region = 32  ;;  %p166_p10 = scmp.lt.s32.totalorder (!%p142_p9), %s871_s28, 7 }
   0xf   : > { %s870_s9 = sshll.u32 (!%p142_p9), %s162_s8, 5  ;;  %s879_s17 = sshll.u32 (!%p142_p9), %s1123_s16, 9 }
  0x10   : > { %s164_s10 = scalar_lea.vmem (!%p142_p9), [#allocation2], %s870_s9  ;;  %s1204_s24 = scalar_lea.hbm (!%p142_p9), %s1251_s3, %s879_s17 }
  0x11   : > { %s804_s11 = sshll.u32 (!%p142_p9), %s164_s10, 4  ;;  %s1208_s16 = scalar_lea.sflag (!%p142_p9), [#allocation3], %s162_s8  ;;  %s1199_s11 = int_to_ptr.vmem [resolvable:$true] %s804_s11 }
  0x12   : > { %s1017_s25 = scalar_lea.vmem (!%p142_p9), %s1199_s11, 512  ;;  %s1079_s26 = smov (!%p142_p9), [#allocation2]  }
  0x13   : > { %v177_v0 = vld [vmem:[%s1249_s1 + $0x8] sm:$0xff]  ;;  %v176_v1 = vld [vmem:[%s1249_s1] sm:$0xff]  ;;  %s1259_s28 = smov (!%p166_p10, %s871_s28), 7  ;;  %vm185_vm0 = vcmask 130048   ;;  %p1018_p11 = scmp.ne.s32.totalorder %s1199_s11, %s1017_s25 }
  0x14   : > { %v1157_v2 = vand.u32 4294901760, %v177_v0  ;;  %v1159_v3 = vand.u32 4294901760, %v176_v1  ;;  %s872_s29 = sshll.u32 %s1259_s28, 3  ;;  %v873_v45 = vld [vmem:[%s1250_s2] ss:$0 sm:$0xff]  ;;  %s1021_s27 = sshll.u32 %s1079_s26, 4  ;;  %s1022_s27 = int_to_ptr.vmem [resolvable:$false] %s1021_s27 }
  0x15   : > { %s169_s5 = scalar_lea.vmem %s1248_s0, %s872_s29  ;;  %p1019_p12 = pnand %p1018_p11, %p1140_p5 }
  0x16   : > { %916 = vmatprep.subr.mxu0 %v1157_v2  ;;  %v335_v4 = vsub.f32 %v177_v0, %v1157_v2  ;;  %v342_v5 = vsub.f32 %v176_v1, %v1159_v3  ;;  %v172_v10 = vld [vmem:[%s169_s5] sm:$0xff]  ;;  %v173_v11 = vld [vmem:[%s169_s5 + $0x8] sm:$0xff]  ;;  %v174_v12 = vld [vmem:[%s169_s5 + $0x10] sm:$0xff]  ;;  %s1023_s28 = scalar_lea.vmem %s1022_s27, 1024  ;;  %p1024_p0 = scmp.lt.s32.totalorder %s1199_s11, %s1022_s27 }
  0x17   : > { %917 = vmatpush3.msra.mxu0 %v1157_v2  ;;  %v187_v13 = vsel %vm185_vm0, %v172_v10, 0  ;;  %v190_v14 = vsel %vm185_vm0, %v173_v11, 0  ;;  %v193_v15 = vsel %vm185_vm0, %v174_v12, 0  ;;  %v175_v16 = vld [vmem:[%s169_s5 + $0x18] sm:$0xff]  ;;  %p1020_p13 = pneg %p1019_p12  ;;  %p1025_p1 = scmp.lt.s32.totalorder %s1023_s28, %s1017_s25 }
  0x18   : > { %v1165_v6 = vand.u32 4294901760, %v335_v4  ;;  %918 = vmatprep.subr.mxu0 %v1159_v3  ;;  %v1168_v7 = vand.u32 4294901760, %v342_v5  ;;  %v265_v19 = vand.u32 4294901760, %v187_v13  ;;  %v275_v20 = vand.u32 4294901760, %v190_v14 }
  0x19   : > { %919 = vmatpush3.msra.mxu0 %v1159_v3  ;;  %v285_v21 = vand.u32 4294901760, %v193_v15  ;;  %v196_v22 = vsel %vm185_vm0, %v175_v16, 0  ;;  %p1026_p2 = por %p1025_p1, %p1024_p0 }
  0x1a   : > { %v337_v8 = vsub.f32 %v335_v4, %v1165_v6  ;;  %v344_v9 = vsub.f32 %v342_v5, %v1168_v7  ;;  %936 = vmatprep.subr.mxu0 %v335_v4  ;;  %v266_v23 = vsub.f32 %v187_v13, %v265_v19  ;;  %930 = vmatprep.mubr.f32.mxu1 %v265_v19  ;;  %v295_v25 = vand.u32 4294901760, %v196_v22 }
  0x1b   : > { %v276_v24 = vsub.f32 %v190_v14, %v275_v20  ;;  %v286_v26 = vsub.f32 %v193_v15, %v285_v21  ;;  %p1027_p3 = pnand %p1026_p2, %p1020_p13 }
  0x1c   : > { %v338_v17 = vand.u32 4294901760, %v337_v8  ;;  %v345_v18 = vand.u32 4294901760, %v344_v9  ;;  %v267_v27 = vand.u32 4294901760, %v266_v23  ;;  %v296_v29 = vsub.f32 %v196_v22, %v295_v25 }
  0x1d   : > { %v277_v28 = vand.u32 4294901760, %v276_v24  ;;  %v287_v30 = vand.u32 4294901760, %v286_v26 }
  0x1e   : > { %926 = vmatprep.subr.mxu1 %v338_v17  ;;  %v268_v31 = vsub.f32 %v266_v23, %v267_v27  ;;  %v297_v33 = vand.u32 4294901760, %v296_v29 }
  0x1f   : > { %927 = vmatpush3.msra.mxu1 %v338_v17  ;;  %v278_v32 = vsub.f32 %v276_v24, %v277_v28  ;;  %v288_v34 = vsub.f32 %v286_v26, %v287_v30 }
  0x20   : > { %928 = vmatprep.subr.mxu1 %v345_v18  ;;  %v269_v35 = vand.u32 4294901760, %v268_v31  ;;  %v298_v37 = vsub.f32 %v296_v29, %v297_v33 }
  0x21   : > { %929 = vmatpush3.msra.mxu1 %v345_v18  ;;  %v279_v36 = vand.u32 4294901760, %v278_v32  ;;  %v289_v38 = vand.u32 4294901760, %v288_v34 }
  0x22   : > { %931 = vmatmul.mubr.f32.vlgmr.msra.gmra.mxu1 %v275_v20  ;;  %946 = vmatprep.subr.mxu1 %v1157_v2  ;;  %v299_v39 = vand.u32 4294901760, %v298_v37 }
  0x23   : > { %947 = vmatpush3.msra.mxu1 %v1157_v2  ;;  %933 = vmatprep.mubr.f32.mxu1 %v285_v21 }
  0x24   : > { %948 = vmatprep.subr.mxu1 %v1159_v3  ;;  %920 = vmatprep.mubr.f32.mxu0 %v269_v35 }
  0x25   : > { %949 = vmatpush3.msra.mxu1 %v1159_v3  ;;  %921 = vmatmul.mubr.f32.vlgmr.msra.gmra.mxu0 %v279_v36 }
  0x26   : > { %934 = vmatmul.mubr.f32.gmra.mxu1 %v295_v25  ;;  %937 = vmatpush3.msra.mxu0 %v335_v4 }
  0x27   : > { %950 = vmatprep.mubr.f32.mxu1 %v267_v27  ;;  %923 = vmatprep.mubr.f32.mxu0 %v289_v38 }
  0x28   : > { %938 = vmatprep.subr.mxu0 %v342_v5  ;;  %966 = vmatprep.subr.mxu1 %v1157_v2 }
  0x29   : > { %939 = vmatpush3.msra.mxu0 %v342_v5 }
  0x2a   : > { %951 = vmatmul.mubr.f32.vlgmr.msra.gmra.mxu1 %v277_v28  ;;  %924 = vmatmul.mubr.f32.gmra.mxu0 %v299_v39 }
  0x2b   : > { %956 = vmatprep.subr.mxu0 %v1165_v6  ;;  %940 = vmatprep.mubr.f32.mxu0 %v266_v23 }
  0x2c   : > { %967 = vmatpush3.msra.mxu1 %v1157_v2  ;;  %953 = vmatprep.mubr.f32.mxu1 %v287_v30 }
  0x2d   : > { %968 = vmatprep.subr.mxu1 %v1159_v3 }
  0x2e   : > { %954 = vmatmul.mubr.f32.gmra.mxu1 %v297_v33  ;;  %941 = vmatmul.mubr.f32.vlgmr.msra.gmra.mxu0 %v276_v24 }
  0x2f   : > { %969 = vmatpush3.msra.mxu1 %v1159_v3  ;;  %957 = vmatpush3.msra.mxu0 %v1165_v6 }
  0x30   : > { %943 = vmatprep.mubr.f32.mxu0 %v286_v26  ;;  %958 = vmatprep.subr.mxu0 %v1168_v7 }
  0x31   : > { %970 = vmatprep.mubr.f32.mxu1 %v265_v19  ;;  %959 = vmatpush3.msra.mxu0 %v1168_v7 }
  0x32   : > { %971 = vmatmul.mubr.f32.vlgmr.msra.gmra.mxu1 %v275_v20  ;;  %944 = vmatmul.mubr.f32.gmra.mxu0 %v296_v29 }
  0x33   : > { %973 = vmatprep.mubr.f32.mxu1 %v285_v21  ;;  %960 = vmatprep.mubr.f32.mxu0 %v265_v19 }
  0x36   : > { %974 = vmatmul.mubr.f32.gmra.mxu1 %v295_v25  ;;  %961 = vmatmul.mubr.f32.vlgmr.msra.gmra.mxu0 %v275_v20 }
  0x37   : > { %963 = vmatprep.mubr.f32.mxu0 %v285_v21 }
  0x3a   : > { %964 = vmatmul.mubr.f32.gmra.mxu0 %v295_v25 }
  0xe2   : > { %v932_v40 = vpop.f32.mrf.mxu1 }
  0xe4   : > { %v382_v41 = vpop.f32.mrf.mxu1 }
  0xe5   : > { %v922_v43 = vpop.f32.mrf.mxu0 }
  0xe6   : > { %v935_v42 = vpop.f32.mrf.mxu1  ;;  %v282_v49 = vadd.f32 %v922_v43, %v873_v45 }
  0xe7   : > { %v271_v46 = vpop.f32.mrf.mxu0 }
  0xe8   : > { %v394_v44 = vpop.f32.mrf.mxu1  ;;  %v272_v52 = vadd.f32 %v873_v45, %v271_v46  ;;  %v389_v55 = vadd.f32 %v932_v40, %v282_v49 }
  0xea   : > { %v952_v47 = vpop.f32.mrf.mxu1  ;;  %v925_v48 = vpop.f32.mrf.mxu0  ;;  %v383_v59 = vadd.f32 %v382_v41, %v272_v52 }
  0xeb   : > { %v302_v56 = vadd.f32 %v925_v48, %v873_v45 }
  0xec   : > { %v572_v50 = vpop.f32.mrf.mxu1  ;;  %v291_v51 = vpop.f32.mrf.mxu0 }
  0xed   : > { %v292_v60 = vadd.f32 %v873_v45, %v291_v51  ;;  %v401_v0 = vadd.f32 %v935_v42, %v302_v56 }
  0xee   : > { %v955_v53 = vpop.f32.mrf.mxu1  ;;  %v942_v54 = vpop.f32.mrf.mxu0 }
  0xef   : > { %v484_v61 = vadd.f32 %v942_v54, %v389_v55  ;;  %v395_v3 = vadd.f32 %v394_v44, %v292_v60 }
  0xf0   : > { %v588_v57 = vpop.f32.mrf.mxu1  ;;  %v476_v58 = vpop.f32.mrf.mxu0 }
  0xf1   : > { %v477_v1 = vadd.f32 %v476_v58, %v383_v59  ;;  %v581_v4 = vadd.f32 %v952_v47, %v484_v61 }
  0xf2   : > { %v945_v62 = vpop.f32.mrf.mxu0  ;;  %v972_v63 = vpop.f32.mrf.mxu1 }
  0xf3   : > { %v498_v5 = vadd.f32 %v945_v62, %v401_v0  ;;  %v573_v8 = vadd.f32 %v572_v50, %v477_v1 }
  0xf4   : > { %v490_v2 = vpop.f32.mrf.mxu0  ;;  %v764_v7 = vpop.f32.mrf.mxu1 }
  0xf5   : > { %v491_v9 = vadd.f32 %v490_v2, %v395_v3  ;;  %v597_v12 = vadd.f32 %v955_v53, %v498_v5 }
  0xf6   : > { %v962_v6 = vpop.f32.mrf.mxu0  ;;  %v975_v16 = vpop.f32.mrf.mxu1 }
  0xf7   : > { %v680_v10 = vadd.f32 %v962_v6, %v581_v4  ;;  %v589_v17 = vadd.f32 %v588_v57, %v491_v9 }
  0xf8   : > { %v673_v11 = vpop.f32.mrf.mxu0  ;;  %v776_v23 = vpop.f32.mrf.mxu1 }
  0xf9   : > { %v771_v13 = vadd.f32 %v972_v63, %v680_v10  ;;  %v674_v14 = vadd.f32 %v673_v11, %v573_v8 }
  0xfa   : > { %v965_v15 = vpop.f32.mrf.mxu0 }
  0xfb   : > { %787 = vst [vmem:[%s164_s10 + $0x8] sm:$0xff] %v771_v13  ;;  %v765_v18 = vadd.f32 %v764_v7, %v674_v14  ;;  %v692_v19 = vadd.f32 %v965_v15, %v597_v12 }
  0xfc   : > { %v685_v20 = vpop.f32.mrf.mxu0 }
  0xfd   : > { %786 = vst [vmem:[%s164_s10] sm:$0xff] %v765_v18  ;;  %v783_v21 = vadd.f32 %v975_v16, %v692_v19  ;;  %v686_v22 = vadd.f32 %v685_v20, %v589_v17 }
  0xff   : > { %789 = vst [vmem:[%s164_s10 + $0x18] sm:$0xff] %v783_v21  ;;  %v777_v24 = vadd.f32 %v776_v23, %v686_v22 }
 0x101   : > { %788 = vst [vmem:[%s164_s10 + $0x10] sm:$0xff] %v777_v24 }
 0x102   : > { %1030 = shalt.err (!%p1027_p3)
}
 0x103   : > { %s1031_s29 = scalar_lea.hbm %s1204_s24, 512  ;;  %s1035_s5 = scalar_lea.hbm %s1251_s3, 1024 }
 0x104   : > { %p1032_p4 = scmp.ne.s32.totalorder %s1204_s24, %s1031_s29  ;;  %p1036_p9 = scmp.lt.s32.totalorder %s1204_s24, %s1251_s3 }
 0x105   : > { %p1037_p10 = scmp.lt.s32.totalorder %s1035_s5, %s1031_s29 }
 0x106   : > { %p1033_p7 = pnand %p1032_p4, %p1140_p5 }
 0x107   : > { %p1038_p11 = por %p1037_p10, %p1036_p9 }
 0x108   : > { %p1034_p8 = pneg %p1033_p7 }
 0x10a   : > { %p1039_p12 = pnand %p1038_p11, %p1034_p8 }
 0x10c   : > { %1042 = shalt.err (!%p1039_p12)
}
 0x10d   : > { %s1080_s8 = smov 128   ;;  %s1081_s9 = smov 8  }
 0x10e   : > { %976 = dma.vmem_to_hbm [thread:$0]  (%p1140_p5), %s1199_s11, 512, %s1204_s24, %s1208_s16, %s1080_s8, %s1080_s8, %s1081_s9  }
 0x10f PF: > { %p982_p13 = scmp.ge.s32.totalorder %s1077_s15, 2  ;;  %s819_s10 = sand.u32 1, %s1065_s12  }
 0x110   : > { %s820_s17 = scalar_lea.sflag [#allocation3], %s819_s10 }
 0x111   : > { %p979_p0 = pnand %p982_p13, %p1144_p6 }
 0x113   : > { %p980_p1 = pneg %p979_p0 }
 0x115   : > { %1060 = dma.done.wait (%p980_p1), %s820_s17, 512  }
 0x116   : > { %1062 = vsyncadd (%p980_p1), %s820_s17, 4294966784  ;;  %p13_p2 = scmp.ge.s32.totalorder %s1127_s18, 4   ;;  %s1254_s12 = smov %s1069_s13 }
 0x117   : > { %s1255_s13 = smov %s1073_s14  ;;  %s1256_s14 = smov %s1138_s21 }
 0x118   : > { %s1257_s15 = smov %s1127_s18  ;;  %15 = sbr.rel (!%p13_p2) target bundleno = 3 (0x3), region = 67 }
 0x11d   :  { %825 = vsyncpa [#allocation3], 1 }
 0x11e   :  { %827 = vsyncpa [#allocation3 + $0x1], 1 }

</bundles_post_ra>
